<compile_context>
chip_gen: v7x
topology: tpu7x:2x2x1
jax: 0.10.0
libtpu: 0.0.40
codegen_flags: <defaults>
</compile_context>

<pallas_src>
import jax
import jax.numpy as jnp
from jax.experimental import pallas as pl
from jax.experimental.pallas import tpu as pltpu


def _self_attention_kernel(x1_ref, x2_ref, x3_ref,
                           wq_ref, wk_ref, wv_ref,
                           bq_ref, bk_ref, bv_ref,
                           o_ref):
    bt, n, h = x1_ref.shape          # (batch tile, rows/"views", hidden)
    cdt = x1_ref.dtype               # MXU input dtype (bf16 on the fast path)

    # Fold the batch tile into the matmul M-dim: one (bt*n, h) x (h, h) MXU
    # pass per projection, f32 accumulation, bias added in f32.
    x1 = x1_ref[...].reshape(bt * n, h)
    x2 = x2_ref[...].reshape(bt * n, h)
    x3 = x3_ref[...].reshape(bt * n, h)

    q = jnp.dot(x1, wq_ref[...], preferred_element_type=jnp.float32) + bq_ref[...]
    k = jnp.dot(x2, wk_ref[...], preferred_element_type=jnp.float32) + bk_ref[...]
    v = jnp.dot(x3, wv_ref[...], preferred_element_type=jnp.float32) + bv_ref[...]

    q = q.reshape(bt, n, h).astype(cdt)
    k = k.reshape(bt, n, h).astype(cdt)
    v = v.reshape(bt, n, h).astype(cdt)

    # attention_scores = q @ k^T per problem, without materializing k^T:
    # contract the hidden dim of q with the hidden dim of k.
    s = jnp.einsum('bqd,bkd->bqk', q, k, preferred_element_type=jnp.float32)

    # Numerically-stable softmax over the key axis (== torch Softmax(dim=1)
    # on the 2-D (N, N) score matrix).  Reciprocal runs on the EUP slot.
    m = jnp.max(s, axis=-1, keepdims=True)
    e = jnp.exp(s - m)
    denom = jnp.sum(e, axis=-1, keepdims=True)

    if n > h:
        # Long sequences: defer normalization (scale N*H values, not N*N).
        out = jnp.einsum('bqk,bkd->bqd', e.astype(cdt), v,
                         preferred_element_type=jnp.float32)
        out = out * pl.reciprocal(denom, approx=True)
    else:
        p = e * pl.reciprocal(denom, approx=True)
        out = jnp.einsum('bqk,bkd->bqd', p.astype(cdt), v,
                         preferred_element_type=jnp.float32)

    o_ref[...] = out.astype(o_ref.dtype)


def prepare_params(wq, bq, wk, bk, wv, bv, dtype=jnp.bfloat16):
    """One-time weight preprocessing (hoisted out of the per-call path).

    PyTorch nn.Linear stores weights as (out, in); the kernel wants the
    pre-transposed (in, out) layout so there is no in-kernel transpose.
    Weights are cast to the MXU input dtype (bf16 by default); biases stay
    f32 (they are added to the f32 accumulator).
    """
    prep_w = lambda w: jnp.asarray(w, jnp.float32).T.astype(dtype)
    prep_b = lambda b: jnp.asarray(b, jnp.float32).reshape(1, -1)
    return (prep_w(wq), prep_w(wk), prep_w(wv),
            prep_b(bq), prep_b(bk), prep_b(bv))


def self_attention(x1, x2, x3, params, *, block_b=32):
    """Pallas SelfAttention forward.

    x1, x2, x3: (N, H) (module semantics) or a batched stack (B, N, H) of
                independent (N, H) problems.
    params    : output of prepare_params(...) (precomputed once per weight set).
    block_b   : independent problems folded into one grid step.
    Returns   : f32, same leading shape as x1 with trailing (N, H).
    """
    wq_t, wk_t, wv_t, bq, bk, bv = params
    cdt = wq_t.dtype

    squeeze = (x1.ndim == 2)
    if squeeze:
        x1, x2, x3 = x1[None], x2[None], x3[None]
    B, N, H = x1.shape

    bt = max(1, min(block_b, B))
    num_blocks = pl.cdiv(B, bt)
    b_pad = num_blocks * bt

    def prep_x(x):
        x = x.astype(cdt)
        if b_pad != B:
            x = jnp.pad(x, ((0, b_pad - B), (0, 0), (0, 0)))
        return x

    x1, x2, x3 = prep_x(x1), prep_x(x2), prep_x(x3)

    act_spec = pl.BlockSpec((bt, N, H), lambda b: (b, 0, 0))
    w_spec = pl.BlockSpec((H, H), lambda b: (0, 0))      # resident, DMA'd once
    bias_spec = pl.BlockSpec((1, H), lambda b: (0, 0))

    itm = jnp.dtype(cdt).itemsize
    flops = b_pad * (3 * 2 * N * H * H + 2 * 2 * N * N * H)
    bytes_accessed = (3 * b_pad * N * H * itm          # activations in
                      + 3 * H * H * itm + 3 * H * 4    # weights + biases
                      + b_pad * N * H * 4)             # f32 output

    out = pl.pallas_call(
        _self_attention_kernel,
        out_shape=jax.ShapeDtypeStruct((b_pad, N, H), jnp.float32),
        grid_spec=pltpu.PrefetchScalarGridSpec(
            num_scalar_prefetch=0,
            grid=(num_blocks,),
            in_specs=[act_spec, act_spec, act_spec,
                      w_spec, w_spec, w_spec,
                      bias_spec, bias_spec, bias_spec],
            out_specs=pl.BlockSpec((bt, N, H), lambda b: (b, 0, 0)),
        ),
        compiler_params=pltpu.CompilerParams(
            dimension_semantics=("parallel",)),
        cost_estimate=pl.CostEstimate(
            flops=flops,
            transcendentals=b_pad * N * N,
            bytes_accessed=bytes_accessed),
    )(x1, x2, x3, wq_t, wk_t, wv_t, bq, bk, bv)

    if b_pad != B:
        out = out[:B]
    if squeeze:
        out = out[0]
    return out


def _reference(x1, x2, x3, wq, bq, wk, bk, wv, bv):
    q = x1 @ wq.T + bq
    k = x2 @ wk.T + bk
    v = x3 @ wv.T + bv
    s = q @ k.T
    p = jax.nn.softmax(s, axis=1)   # torch Softmax(dim=1) on the (N, N) scores
    return p @ v


if __name__ == "__main__":
    N, H = 8, 32   # 8 "views"/rows, nhid = 32

    key = jax.random.PRNGKey(0)
    keys = jax.random.split(key, 12)

    # PyTorch-Linear-style uniform(+/- 1/sqrt(nhid)) init.
    bound = 1.0 / float(H) ** 0.5
    uni = lambda k, shape: jax.random.uniform(k, shape, jnp.float32, -bound, bound)

    wq, bq = uni(keys[0], (H, H)), uni(keys[1], (H,))
    wk, bk = uni(keys[2], (H, H)), uni(keys[3], (H,))
    wv, bv = uni(keys[4], (H, H)), uni(keys[5], (H,))

    params = prepare_params(wq, bq, wk, bk, wv, bv)   # hoisted, once per weight set

    # --- module-shaped (2-D) path --------------------------------------------
    x1 = jax.random.normal(keys[6], (N, H), jnp.float32)
    x2 = jax.random.normal(keys[7], (N, H), jnp.float32)
    x3 = jax.random.normal(keys[8], (N, H), jnp.float32)

    out = jax.block_until_ready(self_attention(x1, x2, x3, params))
    ref = _reference(x1, x2, x3, wq, bq, wk, bk, wv, bv)
    assert out.shape == (N, H)
    # bf16 MXU inputs + EUP approx reciprocal -> loose tolerance vs f32 ref.
    assert jnp.allclose(out, ref, atol=5e-2, rtol=5e-2), "2-D mismatch vs reference"

    # --- batched path (exercises batch folding, grid > 1 and batch padding) ---
    B = 6
    bx1 = jax.random.normal(keys[9],  (B, N, H), jnp.float32)
    bx2 = jax.random.normal(keys[10], (B, N, H), jnp.float32)
    bx3 = jax.random.normal(keys[11], (B, N, H), jnp.float32)

    bout = jax.block_until_ready(self_attention(bx1, bx2, bx3, params, block_b=4))
    bref = jax.vmap(lambda a, b, c: _reference(a, b, c, wq, bq, wk, bk, wv, bv))(
        bx1, bx2, bx3)
    assert bout.shape == (B, N, H)
    assert jnp.allclose(bout, bref, atol=5e-2, rtol=5e-2), "batched mismatch vs reference"

    print("KERNEL_OK")
</pallas_src>

<mosaic_0001>
module attributes {stable_mosaic.version = 11 : i64} {
  func.func @_self_attention_kernel(%arg0: i32, %arg1: memref<1x8x32xbf16, #tpu.memory_space<vmem>>, %arg2: memref<1x8x32xbf16, #tpu.memory_space<vmem>>, %arg3: memref<1x8x32xbf16, #tpu.memory_space<vmem>>, %arg4: memref<32x32xbf16, #tpu.memory_space<vmem>>, %arg5: memref<32x32xbf16, #tpu.memory_space<vmem>>, %arg6: memref<32x32xbf16, #tpu.memory_space<vmem>>, %arg7: memref<1x32xf32, #tpu.memory_space<vmem>>, %arg8: memref<1x32xf32, #tpu.memory_space<vmem>>, %arg9: memref<1x32xf32, #tpu.memory_space<vmem>>, %arg10: memref<1x8x32xf32, #tpu.memory_space<vmem>>) attributes {dimension_semantics = [#tpu.dimension_semantics<parallel>], iteration_bounds = array<i64: 1>, scalar_prefetch = 0 : i64, scratch_operands = 0 : i64, tpu.core_type = #tpu.core_type<tc>, window_params = [{transform_indices = @transform_0, window_bounds = array<i64: 1, 8, 32>}, {transform_indices = @transform_1, window_bounds = array<i64: 1, 8, 32>}, {transform_indices = @transform_2, window_bounds = array<i64: 1, 8, 32>}, {pipeline_mode = #tpu.pipeline_mode<synchronous>, transform_indices = @transform_3, window_bounds = array<i64: 32, 32>}, {pipeline_mode = #tpu.pipeline_mode<synchronous>, transform_indices = @transform_4, window_bounds = array<i64: 32, 32>}, {pipeline_mode = #tpu.pipeline_mode<synchronous>, transform_indices = @transform_5, window_bounds = array<i64: 32, 32>}, {pipeline_mode = #tpu.pipeline_mode<synchronous>, transform_indices = @transform_6, window_bounds = array<i64: 1, 32>}, {pipeline_mode = #tpu.pipeline_mode<synchronous>, transform_indices = @transform_7, window_bounds = array<i64: 1, 32>}, {pipeline_mode = #tpu.pipeline_mode<synchronous>, transform_indices = @transform_8, window_bounds = array<i64: 1, 32>}, {transform_indices = @transform_9, window_bounds = array<i64: 1, 8, 32>}]} {
    %c0 = arith.constant 0 : index
    %c0_0 = arith.constant 0 : index
    %c0_1 = arith.constant 0 : index
    %0 = vector.load %arg1[%c0, %c0_0, %c0_1] : memref<1x8x32xbf16, #tpu.memory_space<vmem>>, vector<1x8x32xbf16>
    %1 = vector.shape_cast %0 : vector<1x8x32xbf16> to vector<8x32xbf16>
    %c0_2 = arith.constant 0 : index
    %c0_3 = arith.constant 0 : index
    %c0_4 = arith.constant 0 : index
    %2 = vector.load %arg2[%c0_2, %c0_3, %c0_4] : memref<1x8x32xbf16, #tpu.memory_space<vmem>>, vector<1x8x32xbf16>
    %3 = vector.shape_cast %2 : vector<1x8x32xbf16> to vector<8x32xbf16>
    %c0_5 = arith.constant 0 : index
    %c0_6 = arith.constant 0 : index
    %c0_7 = arith.constant 0 : index
    %4 = vector.load %arg3[%c0_5, %c0_6, %c0_7] : memref<1x8x32xbf16, #tpu.memory_space<vmem>>, vector<1x8x32xbf16>
    %5 = vector.shape_cast %4 : vector<1x8x32xbf16> to vector<8x32xbf16>
    %c0_8 = arith.constant 0 : index
    %c0_9 = arith.constant 0 : index
    %6 = vector.load %arg4[%c0_8, %c0_9] : memref<32x32xbf16, #tpu.memory_space<vmem>>, vector<32x32xbf16>
    %cst = arith.constant dense<0.000000e+00> : vector<8x32xf32>
    %7 = tpu.matmul %1, %6, %cst {dimension_numbers = #tpu.dot_dimension_numbers<[1], [0], [0], [1], [0, 0, 1, 1], [], []>} : vector<8x32xbf16>, vector<32x32xbf16>, vector<8x32xf32> -> vector<8x32xf32>
    %c0_10 = arith.constant 0 : index
    %c0_11 = arith.constant 0 : index
    %8 = vector.load %arg7[%c0_10, %c0_11] : memref<1x32xf32, #tpu.memory_space<vmem>>, vector<1x32xf32>
    %9 = vector.broadcast %8 : vector<1x32xf32> to vector<8x32xf32>
    %10 = arith.addf %7, %9 : vector<8x32xf32>
    %c0_12 = arith.constant 0 : index
    %c0_13 = arith.constant 0 : index
    %11 = vector.load %arg5[%c0_12, %c0_13] : memref<32x32xbf16, #tpu.memory_space<vmem>>, vector<32x32xbf16>
    %cst_14 = arith.constant dense<0.000000e+00> : vector<8x32xf32>
    %12 = tpu.matmul %3, %11, %cst_14 {dimension_numbers = #tpu.dot_dimension_numbers<[1], [0], [0], [1], [0, 0, 1, 1], [], []>} : vector<8x32xbf16>, vector<32x32xbf16>, vector<8x32xf32> -> vector<8x32xf32>
    %c0_15 = arith.constant 0 : index
    %c0_16 = arith.constant 0 : index
    %13 = vector.load %arg8[%c0_15, %c0_16] : memref<1x32xf32, #tpu.memory_space<vmem>>, vector<1x32xf32>
    %14 = vector.broadcast %13 : vector<1x32xf32> to vector<8x32xf32>
    %15 = arith.addf %12, %14 : vector<8x32xf32>
    %c0_17 = arith.constant 0 : index
    %c0_18 = arith.constant 0 : index
    %16 = vector.load %arg6[%c0_17, %c0_18] : memref<32x32xbf16, #tpu.memory_space<vmem>>, vector<32x32xbf16>
    %cst_19 = arith.constant dense<0.000000e+00> : vector<8x32xf32>
    %17 = tpu.matmul %5, %16, %cst_19 {dimension_numbers = #tpu.dot_dimension_numbers<[1], [0], [0], [1], [0, 0, 1, 1], [], []>} : vector<8x32xbf16>, vector<32x32xbf16>, vector<8x32xf32> -> vector<8x32xf32>
    %c0_20 = arith.constant 0 : index
    %c0_21 = arith.constant 0 : index
    %18 = vector.load %arg9[%c0_20, %c0_21] : memref<1x32xf32, #tpu.memory_space<vmem>>, vector<1x32xf32>
    %19 = vector.broadcast %18 : vector<1x32xf32> to vector<8x32xf32>
    %20 = arith.addf %17, %19 : vector<8x32xf32>
    %21 = vector.shape_cast %10 : vector<8x32xf32> to vector<1x8x32xf32>
    %22 = arith.truncf %21 : vector<1x8x32xf32> to vector<1x8x32xbf16>
    %23 = vector.shape_cast %15 : vector<8x32xf32> to vector<1x8x32xf32>
    %24 = arith.truncf %23 : vector<1x8x32xf32> to vector<1x8x32xbf16>
    %25 = vector.shape_cast %20 : vector<8x32xf32> to vector<1x8x32xf32>
    %26 = arith.truncf %25 : vector<1x8x32xf32> to vector<1x8x32xbf16>
    "tpu.trace_start"() <{level = 10 : i32, message = "bqd,bkd->bqk"}> : () -> ()
    %cst_22 = arith.constant dense<0.000000e+00> : vector<1x8x8xf32>
    %27 = tpu.matmul %22, %24, %cst_22 {dimension_numbers = #tpu.dot_dimension_numbers<[2], [2], [1], [1], [0, 0, 0, 1, 1, 1], [0], [0]>} : vector<1x8x32xbf16>, vector<1x8x32xbf16>, vector<1x8x8xf32> -> vector<1x8x8xf32>
    "tpu.trace_stop"() : () -> ()
    %cst_23 = arith.constant dense<0xFF800000> : vector<1x8xf32>
    %28 = vector.multi_reduction <maximumf>, %27, %cst_23 [2] : vector<1x8x8xf32> to vector<1x8xf32>
    %29 = vector.shape_cast %28 : vector<1x8xf32> to vector<1x8x1xf32>
    %30 = vector.broadcast %29 : vector<1x8x1xf32> to vector<1x8x8xf32>
    %31 = arith.subf %27, %30 : vector<1x8x8xf32>
    %32 = math.exp %31 : vector<1x8x8xf32>
    %cst_24 = arith.constant dense<0.000000e+00> : vector<1x8xf32>
    %33 = vector.multi_reduction <add>, %32, %cst_24 [2] : vector<1x8x8xf32> to vector<1x8xf32>
    %34 = vector.shape_cast %33 : vector<1x8xf32> to vector<1x8x1xf32>
    %35 = tpu.reciprocal %34 {approx = true} : vector<1x8x1xf32> -> vector<1x8x1xf32>
    %36 = vector.broadcast %35 : vector<1x8x1xf32> to vector<1x8x8xf32>
    %37 = arith.mulf %32, %36 : vector<1x8x8xf32>
    %38 = arith.truncf %37 : vector<1x8x8xf32> to vector<1x8x8xbf16>
    "tpu.trace_start"() <{level = 10 : i32, message = "bqk,bkd->bqd"}> : () -> ()
    %cst_25 = arith.constant dense<0.000000e+00> : vector<1x8x32xf32>
    %39 = tpu.matmul %38, %26, %cst_25 {dimension_numbers = #tpu.dot_dimension_numbers<[2], [1], [1], [2], [0, 0, 0, 1, 1, 2], [0], [0]>} : vector<1x8x8xbf16>, vector<1x8x32xbf16>, vector<1x8x32xf32> -> vector<1x8x32xf32>
    "tpu.trace_stop"() : () -> ()
    %c0_26 = arith.constant 0 : index
    %c0_27 = arith.constant 0 : index
    %c0_28 = arith.constant 0 : index
    %40 = vector.load %arg10[%c0_26, %c0_27, %c0_28] : memref<1x8x32xf32, #tpu.memory_space<vmem>>, vector<1x8x32xf32>
    tpu.vector_store %arg10[%c0_26, %c0_27, %c0_28], %39 {strides = array<i32>} : memref<1x8x32xf32, #tpu.memory_space<vmem>>, vector<1x8x32xf32>,
    return
  }
  func.func @transform_0(%arg0: i32) -> (i32, i32, i32) {
    %c0_i32 = arith.constant 0 : i32
    %c0_i32_0 = arith.constant 0 : i32
    %c0_i32_1 = arith.constant 0 : i32
    return %arg0, %c0_i32, %c0_i32_0 : i32, i32, i32
  }
  func.func @transform_1(%arg0: i32) -> (i32, i32, i32) {
    %c0_i32 = arith.constant 0 : i32
    %c0_i32_0 = arith.constant 0 : i32
    %c0_i32_1 = arith.constant 0 : i32
    return %arg0, %c0_i32, %c0_i32_0 : i32, i32, i32
  }
  func.func @transform_2(%arg0: i32) -> (i32, i32, i32) {
    %c0_i32 = arith.constant 0 : i32
    %c0_i32_0 = arith.constant 0 : i32
    %c0_i32_1 = arith.constant 0 : i32
    return %arg0, %c0_i32, %c0_i32_0 : i32, i32, i32
  }
  func.func @transform_3(%arg0: i32) -> (i32, i32) {
    %c0_i32 = arith.constant 0 : i32
    %c0_i32_0 = arith.constant 0 : i32
    %c0_i32_1 = arith.constant 0 : i32
    return %c0_i32, %c0_i32_0 : i32, i32
  }
  func.func @transform_4(%arg0: i32) -> (i32, i32) {
    %c0_i32 = arith.constant 0 : i32
    %c0_i32_0 = arith.constant 0 : i32
    %c0_i32_1 = arith.constant 0 : i32
    return %c0_i32, %c0_i32_0 : i32, i32
  }
  func.func @transform_5(%arg0: i32) -> (i32, i32) {
    %c0_i32 = arith.constant 0 : i32
    %c0_i32_0 = arith.constant 0 : i32
    %c0_i32_1 = arith.constant 0 : i32
    return %c0_i32, %c0_i32_0 : i32, i32
  }
  func.func @transform_6(%arg0: i32) -> (i32, i32) {
    %c0_i32 = arith.constant 0 : i32
    %c0_i32_0 = arith.constant 0 : i32
    %c0_i32_1 = arith.constant 0 : i32
    return %c0_i32, %c0_i32_0 : i32, i32
  }
  func.func @transform_7(%arg0: i32) -> (i32, i32) {
    %c0_i32 = arith.constant 0 : i32
    %c0_i32_0 = arith.constant 0 : i32
    %c0_i32_1 = arith.constant 0 : i32
    return %c0_i32, %c0_i32_0 : i32, i32
  }
  func.func @transform_8(%arg0: i32) -> (i32, i32) {
    %c0_i32 = arith.constant 0 : i32
    %c0_i32_0 = arith.constant 0 : i32
    %c0_i32_1 = arith.constant 0 : i32
    return %c0_i32, %c0_i32_0 : i32, i32
  }
  func.func @transform_9(%arg0: i32) -> (i32, i32, i32) {
    %c0_i32 = arith.constant 0 : i32
    %c0_i32_0 = arith.constant 0 : i32
    %c0_i32_1 = arith.constant 0 : i32
    return %arg0, %c0_i32, %c0_i32_0 : i32, i32, i32
  }
}

</mosaic_0001>

<bundles_post_ra>
// kernel: tpu_custom_call.1
= control target key start
LH: loop header
LB: loop body
LE: loop exit
PB: predicated region body
PF: predicated region fallthrough
CT: control target
= control target key end

     0   :  { %14 = vsyncpa [#allocation3], 0  ;;  %s822_s0 = inlined_call_operand.hbm [shape: bf16[1,8,32], index: 0, kind: input, shape index: {}]   ;;  %s823_s1 = inlined_call_operand.hbm [shape: bf16[1,8,32], index: 1, kind: input, shape index: {}]   ;;  %s824_s2 = inlined_call_operand.hbm [shape: bf16[1,8,32], index: 2, kind: input, shape index: {}]   ;;  %s825_s3 = inlined_call_operand.hbm [shape: bf16[32,32], index: 3, kind: input, shape index: {}]   ;;  %s826_s4 = inlined_call_operand.hbm [shape: bf16[32,32], index: 4, kind: input, shape index: {}]   ;;  %s827_s5 = inlined_call_operand.vmem [shape: bf16[32,32], index: 5, kind: input, shape index: {}]   ;;  %s828_s6 = inlined_call_operand.vmem [shape: f32[1,32], index: 6, kind: input, shape index: {}]   ;;  %s829_s7 = inlined_call_operand.vmem [shape: f32[1,32], index: 7, kind: input, shape index: {}]   ;;  %s830_s8 = inlined_call_operand.vmem [shape: f32[1,32], index: 8, kind: input, shape index: {}]   ;;  %s831_s9 = inlined_call_operand.hbm [shape: f32[1,8,32], index: 9, kind: output, shape index: {}]  }
   0x1   :  { %15 = vsyncpa [#allocation6], 0 }
   0x2   :  { %16 = vsyncpa [#allocation9], 0 }
   0x3   :  { %17 = vsyncpa [#allocation4], 0  ;;  %s648_s30 = smov [#allocation5]   ;;  %s649_s11 = smov [#allocation8]  }
   0x4   :  { %s34_s10 = sshll.u32 %s648_s30, 4  ;;  %s53_s12 = sshll.u32 %s649_s11, 4  ;;  %s35_s10 = int_to_ptr.vmem [resolvable:$true] %s34_s10  ;;  %s708_s12 = int_to_ptr.vmem [resolvable:$true] %s53_s12 }
   0x5   :  { %s508_s15 = scalar_lea.hbm %s823_s1, 64 }
   0x6   :  { %p509_p0 = scmp.ne.s32.totalorder %s823_s1, %s508_s15  ;;  %p512_p1 = scmp.lt.u32.totalorder %s508_s15, %s823_s1 }
   0x8   :  { %p514_p2 = pnand %p512_p1, %p509_p0 }
   0xa   :  { %517 = shalt.err (!%p514_p2)
}
   0xb   :  { %s518_s20 = scalar_lea.vmem %s35_s10, 64  ;;  %p523_p4 = scmp.lt.s32.totalorder %s35_s10, %s35_s10 }
   0xc   :  { %p519_p3 = scmp.ne.s32.totalorder %s35_s10, %s518_s20  ;;  %p524_p5 = scmp.lt.s32.totalorder %s518_s20, %s518_s20 }
   0xe   :  { %p525_p6 = por %p524_p5, %p523_p4 }
  0x10   :  { %p526_p7 = pnand %p525_p6, %p519_p3 }
  0x12   :  { %529 = shalt.err (!%p526_p7)
}
  0x13   :  { %37 = dma.hbm_to_vmem [thread:$0]  %s823_s1, 64, %s35_s10, [#allocation6]  }
  0x14   :  { %s530_s25 = scalar_lea.hbm %s825_s3, 256 }
  0x15   :  { %p531_p8 = scmp.ne.s32.totalorder %s825_s3, %s530_s25  ;;  %p534_p9 = scmp.lt.u32.totalorder %s530_s25, %s825_s3 }
  0x17   :  { %p536_p10 = pnand %p534_p9, %p531_p8 }
  0x19   :  { %539 = shalt.err (!%p536_p10)
}
  0x1a   :  { %s540_s30 = scalar_lea.vmem %s708_s12, 256  ;;  %p545_p12 = scmp.lt.s32.totalorder %s708_s12, %s708_s12 }
  0x1b   :  { %p541_p11 = scmp.ne.s32.totalorder %s708_s12, %s540_s30  ;;  %p546_p13 = scmp.lt.s32.totalorder %s540_s30, %s540_s30 }
  0x1d   :  { %p547_p0 = por %p546_p13, %p545_p12 }
  0x1f   :  { %p548_p1 = pnand %p547_p0, %p541_p11 }
  0x21   :  { %551 = shalt.err (!%p548_p1)
}
  0x22   :  { %s650_s1 = smov 64   ;;  %s651_s10 = smov 4  }
  0x23   :  { %59 = dma.hbm_to_vmem [thread:$0]  %s825_s3, 256, %s708_s12, [#allocation9], %s650_s1, %s650_s1, %s651_s10  }
  0x24   :  { %s652_s14 = smov [#allocation2]   ;;  %s653_s16 = smov [#allocation7]  }
  0x25   :  { %s24_s15 = sshll.u32 %s652_s14, 4  ;;  %s44_s17 = sshll.u32 %s653_s16, 4  ;;  %s25_s15 = int_to_ptr.vmem [resolvable:$true] %s24_s15  ;;  %s45_s17 = int_to_ptr.vmem [resolvable:$true] %s44_s17 }
  0x26   :  { %s552_s20 = scalar_lea.hbm %s822_s0, 64 }
  0x27   :  { %p553_p2 = scmp.ne.s32.totalorder %s822_s0, %s552_s20  ;;  %p556_p3 = scmp.lt.u32.totalorder %s552_s20, %s822_s0 }
  0x29   :  { %p558_p4 = pnand %p556_p3, %p553_p2 }
  0x2b   :  { %561 = shalt.err (!%p558_p4)
}
  0x2c   :  { %s562_s3 = scalar_lea.vmem %s25_s15, 64  ;;  %p567_p6 = scmp.lt.s32.totalorder %s25_s15, %s25_s15 }
  0x2d   :  { %p563_p5 = scmp.ne.s32.totalorder %s25_s15, %s562_s3  ;;  %p568_p7 = scmp.lt.s32.totalorder %s562_s3, %s562_s3 }
  0x2f   :  { %p569_p8 = por %p568_p7, %p567_p6 }
  0x31   :  { %p570_p9 = pnand %p569_p8, %p563_p5 }
  0x33   :  { %573 = shalt.err (!%p570_p9)
}
  0x34   :  { %27 = dma.hbm_to_vmem [thread:$0]  %s822_s0, 64, %s25_s15, [#allocation3]  }
  0x35   :  { %s574_s28 = scalar_lea.hbm %s824_s2, 64 }
  0x36   :  { %p575_p10 = scmp.ne.s32.totalorder %s824_s2, %s574_s28  ;;  %p578_p11 = scmp.lt.u32.totalorder %s574_s28, %s824_s2 }
  0x38   :  { %p580_p12 = pnand %p578_p11, %p575_p10 }
  0x3a   :  { %583 = shalt.err (!%p580_p12)
}
  0x3b   :  { %s584_s14 = scalar_lea.vmem %s45_s17, 64  ;;  %p589_p0 = scmp.lt.s32.totalorder %s45_s17, %s45_s17 }
  0x3c   :  { %p585_p13 = scmp.ne.s32.totalorder %s45_s17, %s584_s14  ;;  %p590_p1 = scmp.lt.s32.totalorder %s584_s14, %s584_s14 }
  0x3e   :  { %p591_p2 = por %p590_p1, %p589_p0 }
  0x40   :  { %p592_p3 = pnand %p591_p2, %p585_p13 }
  0x42   :  { %595 = shalt.err (!%p592_p3)
}
  0x43   :  { %47 = dma.hbm_to_vmem [thread:$0]  %s824_s2, 64, %s45_s17, [#allocation6]  }
  0x44   :  { %s654_s16 = smov [#allocation10]   ;;  %s596_s21 = scalar_lea.hbm %s826_s4, 256 }
  0x45   :  { %s65_s18 = sshll.u32 %s654_s16, 4  ;;  %p597_p4 = scmp.ne.s32.totalorder %s826_s4, %s596_s21  ;;  %s66_s18 = int_to_ptr.vmem [resolvable:$true] %s65_s18 }
  0x46   :  { %p600_p5 = scmp.lt.u32.totalorder %s596_s21, %s826_s4 }
  0x48   :  { %p602_p6 = pnand %p600_p5, %p597_p4 }
  0x4a   :  { %605 = shalt.err (!%p602_p6)
}
  0x4b   :  { %s606_s12 = scalar_lea.vmem %s66_s18, 256  ;;  %p611_p8 = scmp.lt.s32.totalorder %s66_s18, %s66_s18 }
  0x4c   :  { %p607_p7 = scmp.ne.s32.totalorder %s66_s18, %s606_s12  ;;  %p612_p9 = scmp.lt.s32.totalorder %s606_s12, %s606_s12 }
  0x4e   :  { %p613_p10 = por %p612_p9, %p611_p8 }
  0x50   :  { %p614_p11 = pnand %p613_p10, %p607_p7 }
  0x52   :  { %617 = shalt.err (!%p614_p11)
}
  0x53   :  { %71 = dma.hbm_to_vmem [thread:$0]  %s826_s4, 256, %s66_s18, [#allocation9], %s650_s1, %s650_s1, %s651_s10  }
  0x54   :  { %640 = dma.done.wait [#allocation3], 64  }
  0x55   :  { %641 = vsyncadd [#allocation3], 4294967232 }
  0x56   :  { %642 = dma.done.wait [#allocation6], 128  }
  0x57   :  { %643 = vsyncadd [#allocation6], 4294967168 }
  0x58   :  { %644 = dma.done.wait [#allocation9], 512  }
  0x59   :  { %645 = vsyncadd [#allocation9], 4294966784  ;;  %v655_v0 = vmov 0.0   ;;  %vm656_vm0 = vmmov 0   ;;  %v498_v1 = vld [vmem:[#allocation10] sm:$0xff]   ;;  %v499_v2 = vld [vmem:[#allocation10 + $0x8] sm:$0xff]  }
  0x5a   :  { %460 = vmatprep.subr.bf16.mxu1 %v655_v0  ;;  %452 = vmatprep.subr.bf16.mxu0 %v655_v0  ;;  %v500_v3 = vld [vmem:[#allocation8] sm:$0xff]   ;;  %v501_v4 = vld [vmem:[#allocation8 + $0x8] sm:$0xff]   ;;  %v97_v5 = vld [vmem:[#allocation5] sm:$0xf]  ;;  %vm122_vm1 = vcmask 261120   ;;  %vm347_vm2 = vcmask 64512  }
  0x5b   :  { %464 = vmatprep.mubr.msk.bf16.mxu1 %vm656_vm0, %v655_v0  ;;  %456 = vmatprep.mubr.msk.bf16.mxu0 %vm656_vm0, %v655_v0  ;;  %v96_v6 = vld [vmem:[#allocation2] sm:$0xf]  ;;  %v429_v7 = vld [vmem:[%s829_s7] ss:$0 sm:$0xff]  ;;  %v503_v23 = vld [vmem:[%s827_s5 + $0x8] sm:$0xff]   ;;  %vm363_vm3 = vcmask 1043456  }
  0x5c   :  { %461 = vmatpush3.bf16.msra.mxu1 %v498_v1  ;;  %453 = vmatpush3.bf16.msra.mxu0 %v500_v3  ;;  %v425_v12 = vld [vmem:[%s828_s6] ss:$0 sm:$0xff]  ;;  %v98_v24 = vld [vmem:[#allocation7] sm:$0xf]  ;;  %s657_s29 = smov [#allocation11]  }
  0x5d   :  { %462 = vmatprep.subr.bf16.mxu1 %v655_v0  ;;  %454 = vmatprep.subr.bf16.mxu0 %v655_v0  ;;  %v502_v22 = vld [vmem:[%s827_s5] sm:$0xff]   ;;  %s414_s30 = sshll.u32 %s657_s29, 4  ;;  %s415_s30 = int_to_ptr.vmem [resolvable:$true] %s414_s30 }
  0x5e   :  { %v433_v38 = vld [vmem:[%s830_s8] ss:$0 sm:$0xff]  ;;  %s618_s8 = scalar_lea.vmem %s415_s30, 128  ;;  %p623_p13 = scmp.lt.s32.totalorder %s415_s30, %s415_s30 }
  0x5f   :  { %p619_p12 = scmp.ne.s32.totalorder %s415_s30, %s618_s8  ;;  %p624_p0 = scmp.lt.s32.totalorder %s618_s8, %s618_s8 }
  0x60   :  { %463 = vmatpush3.bf16.msra.mxu1 %v499_v2  ;;  %455 = vmatpush3.bf16.msra.mxu0 %v501_v4 }
  0x61   :  { %476 = vmatprep.subr.bf16.mxu1 %v655_v0  ;;  %468 = vmatprep.subr.bf16.mxu0 %v655_v0  ;;  %p625_p1 = por %p624_p0, %p623_p13 }
  0x63   :  { %465 = vmatmul.mubr.msk.bf16.vlgmr.msra.gmra.mrb[0].mxu1 %vm122_vm1, %v97_v5  ;;  %457 = vmatmul.mubr.msk.bf16.vlgmr.msra.gmra.mrb[0].mxu0 %vm122_vm1, %v96_v6  ;;  %p626_p2 = pnand %p625_p1, %p619_p12 }
  0x64   :  { %478 = vmatprep.mubr.msk.bf16.mxu1 %vm656_vm0, %v655_v0  ;;  %472 = vmatprep.mubr.msk.bf16.mxu0 %vm656_vm0, %v655_v0 }
  0x65   :  { %469 = vmatpush3.bf16.msra.mxu0 %v502_v22 }
  0x66   :  { %470 = vmatprep.subr.bf16.mxu0 %v655_v0 }
  0x69   :  { %471 = vmatpush3.bf16.msra.mxu0 %v503_v23 }
  0x6a   :  { %482 = vmatprep.subr.bf16.mxu0 %v655_v0 }
  0x6c   :  { %473 = vmatmul.mubr.msk.bf16.vlgmr.msra.gmra.mrb[4].mxu0 %vm122_vm1, %v98_v24 }
  0x6d   :  { %484 = vmatprep.mubr.msk.bf16.mxu0 %vm656_vm0, %v655_v0 }
 0x136   :  { %v226_v8 = vpop.f32.mrb[0].mxu1  ;;  %v160_v13 = vpop.f32.mrb[0].mxu0 }
 0x137   :  { %v227_v9 = vadd.f32 %v429_v7, %v226_v8  ;;  %v466_v10 = vpop.f32.mrb[1].mxu1  ;;  %v458_v16 = vpop.f32.mrb[1].mxu0  ;;  %v161_v19 = vadd.f32 %v425_v12, %v160_v13 }
 0x138   :  { %v229_v11 = vpop.f32.mrb[2].mxu1  ;;  %v163_v17 = vpop.f32.mrb[2].mxu0 }
 0x139   :  { %v299_v14 = vpack.c.bf16 %v227_v9, %v227_v9  ;;  %v467_v15 = vpop.f32.mrb[3].mxu1  ;;  %v459_v20 = vpop.f32.mrb[3].mxu0  ;;  %v298_v21 = vpack.c.bf16 %v161_v19, %v161_v19 }
 0x13b   :  { %v305_v18 = vsel %vm122_vm1, %v299_v14, 0 }
 0x13c   :  { %477 = vmatpush3.bf16.xpose.msra.mxu1 %v305_v18 }
 0x13f   :  { %v292_v35 = vpop.f32.mrb[4].mxu0 }
 0x140   :  { %v474_v36 = vpop.f32.mrb[5].mxu0  ;;  %v293_v40 = vadd.f32 %v433_v38, %v292_v35 }
 0x141   :  { %v295_v37 = vpop.f32.mrb[6].mxu0 }
 0x142   :  { %v475_v39 = vpop.f32.mrb[7].mxu0  ;;  %v300_v41 = vpack.c.bf16 %v293_v40, %v293_v40 }
 0x143   :  { %479 = vmatmul.mubr.msk.bf16.vlgmr.msra.gmra.mrb[4].mxu1 %vm122_vm1, %v298_v21 }
 0x144   :  { %v365_v42 = vsel %vm363_vm3, %v300_v41, 0 }
 0x145   :  { %483 = vmatpush3.bf16.msra.mxu0 %v365_v42 }
 0x216   :  { %v341_v25 = vpop.f32.mrb[4].mxu1 }
 0x217   :  { %v480_v26 = vpop.f32.mrb[5].mxu1  ;;  %v348_v27 = vsel %vm347_vm2, %v341_v25, -inf }
 0x218   :  { %349 = vmax.xlane.f32.xlu0 %v348_v27  ;;  %v344_v28 = vpop.f32.mrb[6].mxu1 }
 0x219   :  { %v481_v29 = vpop.f32.mrb[7].mxu1 }
 0x2a5   :  { %v350_v30 = vpop.xlane.xlu0 %349 }
 0x2a6   :  { %v351_v31 = vsub.f32 %v341_v25, %v350_v30 }
 0x2a8   :  { %v352_v32 = vmul.f32 1.442695, %v351_v31 }
 0x2aa   :  { %504 = vpow2.f32 %v352_v32 }
 0x2b4   :  { %v505_v33 = vpop.eup %504 }
 0x2b5   :  { %v354_v34 = vsel %vm347_vm2, %v505_v33, 0.0 }
 0x2b6   :  { %355 = vadd.xlane.f32.xlu0 %v354_v34 }
 0x343   :  { %v356_v43 = vpop.xlane.xlu0 %355 }
 0x344   :  { %506 = vrcp.f32 %v356_v43 }
 0x34e   :  { %v507_v44 = vpop.eup %506 }
 0x34f   :  { %v358_v45 = vmul.f32 %v507_v44, %v505_v33 }
 0x351   :  { %v359_v46 = vpack.c.bf16 %v358_v45, %v358_v45 }
 0x353   :  { %485 = vmatmul.mubr.msk.bf16.vlgmr.msra.gmra.mrb[8].mxu0 %vm347_vm2, %v359_v46 }
 0x426   :  { %v401_v47 = vpop.f32.mrb[8].mxu0 }
 0x427   :  { %407 = vst.msk [vmem:[#allocation11] sm:$0xff] %vm122_vm1, %v401_v47  ;;  %v486_v48 = vpop.f32.mrb[9].mxu0 }
 0x428   :  { %v404_v49 = vpop.f32.mrb[10].mxu0 }
 0x429   :  { %629 = shalt.err (!%p626_p2)
}
 0x42a   :  { %s630_s14 = scalar_lea.hbm %s831_s9, 128 }
 0x42b   :  { %p631_p3 = scmp.ne.s32.totalorder %s831_s9, %s630_s14  ;;  %p634_p4 = scmp.lt.u32.totalorder %s630_s14, %s831_s9 }
 0x42d   :  { %p636_p5 = pnand %p634_p4, %p631_p3 }
 0x42f   :  { %639 = shalt.err (!%p636_p5)
}
 0x430   :  { %417 = dma.vmem_to_hbm [thread:$0]  %s415_s30, 128, %s831_s9, [#allocation4]   ;;  %v487_v50 = vpop.f32.mrb[11].mxu0 }
 0x431   :  { %646 = dma.done.wait [#allocation4], 128  }
 0x432   :  { %647 = vsyncadd [#allocation4], 4294967168 }
 0x433   :  { %421 = vsyncpa [#allocation3], 1 }
 0x434   :  { %422 = vsyncpa [#allocation6], 1 }
 0x435   :  { %423 = vsyncpa [#allocation9], 1 }
 0x436   :  { %424 = vsyncpa [#allocation4], 1 }

</bundles_post_ra>
